<compile_context>
chip_gen: v5e
topology: v5e:2x2
jax: 0.10.0
libtpu: 0.0.40
codegen_flags: <defaults>
</compile_context>

<pallas_src>
import functools

import jax
import jax.numpy as jnp
from jax.experimental import pallas as pl
from jax.experimental.pallas import tpu as pltpu


# ----------------------------------------------------------------------------
# helpers
# ----------------------------------------------------------------------------
def _vmem_capacity_bytes():
    """Per-TensorCore VMEM capacity; conservative fallback if query fails."""
    try:
        return int(pltpu.get_tpu_info().vmem_capacity_bytes)
    except Exception:
        return 64 * 1024 * 1024  # v7x per-TC VMEM (smallest of the generations)


def _largest_divisor_at_most(n, cap):
    cap = max(1, min(int(cap), int(n)))
    while n % cap:
        cap -= 1
    return cap


# ----------------------------------------------------------------------------
# single-pass fused kernel: pool + gate + rescale, one x read / one x write
# ----------------------------------------------------------------------------
def _se_fused_kernel(x_ref, w_ref, o_ref, *, hid, inv_hw):
    # x_ref / o_ref block: (Bt, C, HW)   w_ref: (C, 2*hid) f32 = [fc1.T | fc2]
    # 1) global average pool: lane-axis sum in f32, then scale by 1/(H*W).
    pooled = jnp.sum(x_ref[...].astype(jnp.float32), axis=-1) * inv_hw   # (Bt, C)

    # 2) tiny SE gate, exact f32 on VPU/XLU (hid = C//r is tiny; keeps the gate
    #    math off the MXU-precision path and off the HBM-bound critical path).
    w = w_ref[...]                      # (C, 2*hid) f32
    w1t = w[:, :hid]                    # (C, hid)  == fc1.weight.T
    w2m = w[:, hid:]                    # (C, hid)  == fc2.weight
    h = jnp.maximum(jnp.sum(pooled[:, :, None] * w1t[None, :, :], axis=1), 0.0)  # (Bt, hid)
    y = jax.nn.sigmoid(jnp.sum(h[:, None, :] * w2m[None, :, :], axis=-1))        # (Bt, C)

    # 3) per-channel rescale in the I/O dtype (packed bf16 VPU path on v6e/v7x;
    #    re-index x_ref instead of keeping the f32 upcast live).
    o_ref[...] = x_ref[...] * y.astype(o_ref.dtype)[:, :, None]


def _se_single_pass(x_flat, w_cat, hid, inv_hw, bt_vmem_cap, budget):
    B, C, HW = x_flat.shape
    itemsize = x_flat.dtype.itemsize
    per_batch = C * HW * itemsize

    # ~1-2 MiB blocks reach the HBM roofline; keep >= 2 grid steps so both v7x
    # TensorCores get work; make Bt a divisor of B so there is no ragged tail.
    bt = min(max(1, (2 * 1024 * 1024) // per_batch), bt_vmem_cap, B)
    if B >= 2:
        bt = min(bt, B // 2)
    bt = _largest_divisor_at_most(B, bt)

    block_bytes = bt * per_batch
    vmem_limit = int(4 * block_bytes * 1.3) + int(w_cat.size) * 4 + (2 << 20)
    vmem_limit = max(16 << 20, min(vmem_limit, int(budget * 0.85)))

    cost = pl.CostEstimate(
        flops=int(B * (3 * C * HW + 4 * C * hid)),
        transcendentals=int(B * C),
        bytes_accessed=int(2 * B * C * HW * itemsize + w_cat.size * 4),
    )

    kernel = functools.partial(_se_fused_kernel, hid=hid, inv_hw=inv_hw)
    return pl.pallas_call(
        kernel,
        out_shape=jax.ShapeDtypeStruct((B, C, HW), x_flat.dtype),
        grid_spec=pltpu.PrefetchScalarGridSpec(
            num_scalar_prefetch=0,
            grid=(B // bt,),
            in_specs=[
                pl.BlockSpec((bt, C, HW), lambda b: (b, 0, 0)),
                pl.BlockSpec((C, 2 * hid), lambda b: (0, 0)),   # resident weights
            ],
            out_specs=pl.BlockSpec((bt, C, HW), lambda b: (b, 0, 0)),
        ),
        compiler_params=pltpu.CompilerParams(
            dimension_semantics=("parallel",),
            vmem_limit_bytes=vmem_limit,
        ),
        cost_estimate=cost,
    )(x_flat, w_cat)


# ----------------------------------------------------------------------------
# two-pass fallback for shapes whose (Bt=1) block does not fit VMEM
# ----------------------------------------------------------------------------
def _pool_kernel(x_ref, s_ref, *, hw, thw):
    j = pl.program_id(1)

    @pl.when(j == 0)
    def _():
        s_ref[...] = jnp.zeros_like(s_ref)

    xv = x_ref[...].astype(jnp.float32)                  # (Bt, C, THW)
    if hw % thw:                                          # ragged spatial tail
        col = jax.lax.broadcasted_iota(jnp.int32, xv.shape, 2) + j * thw
        xv = jnp.where(col < hw, xv, 0.0)
    s_ref[...] += jnp.sum(xv, axis=-1, keepdims=True)     # (Bt, C, 1)


def _rescale_kernel(x_ref, g_ref, o_ref):
    o_ref[...] = x_ref[...] * g_ref[...]                  # (Bt,C,THW)*(Bt,C,1)


def _se_two_pass(x_flat, w1, w2, hid, budget, thw_override=None):
    B, C, HW = x_flat.shape
    itemsize = x_flat.dtype.itemsize

    target = 1 << 20
    if thw_override is not None:
        thw = int(thw_override)
    else:
        thw = 128 * max(1, min(pl.cdiv(HW, 128),
                               target // max(1, 128 * C * itemsize)))
    if thw >= HW:
        thw = HW                      # full spatial extent is always legal
    n_hw = pl.cdiv(HW, thw)

    per_block = C * thw * itemsize
    bt = _largest_divisor_at_most(B, max(1, min(B, target // max(1, per_block))))
    if B >= 2:
        bt = _largest_divisor_at_most(B, max(1, min(bt, B // 2)))

    vmem_limit = int(4 * bt * per_block * 1.3) + (2 << 20)
    vmem_limit = max(16 << 20, min(vmem_limit, int(budget * 0.85)))

    # pass 1: tiled global sum over the spatial axis (f32 accumulator).
    pooled = pl.pallas_call(
        functools.partial(_pool_kernel, hw=HW, thw=thw),
        out_shape=jax.ShapeDtypeStruct((B, C, 1), jnp.float32),
        grid_spec=pltpu.PrefetchScalarGridSpec(
            num_scalar_prefetch=0,
            grid=(B // bt, n_hw),
            in_specs=[pl.BlockSpec((bt, C, thw), lambda b, j: (b, 0, j))],
            out_specs=pl.BlockSpec((bt, C, 1), lambda b, j: (b, 0, 0)),
        ),
        compiler_params=pltpu.CompilerParams(
            dimension_semantics=("parallel", "arbitrary"),
            vmem_limit_bytes=vmem_limit,
        ),
    )(x_flat)

    # tiny SE gate on the plain XLA path (B x C), highest precision f32.
    y = pooled[..., 0] * (1.0 / HW)
    h = jax.nn.relu(jnp.einsum("bc,hc->bh", y, w1.astype(jnp.float32),
                               precision=jax.lax.Precision.HIGHEST))
    g = jax.nn.sigmoid(jnp.einsum("bh,ch->bc", h, w2.astype(jnp.float32),
                                  precision=jax.lax.Precision.HIGHEST))
    gate = g.astype(x_flat.dtype).reshape(B, C, 1)

    # pass 2: tiled per-channel rescale.
    return pl.pallas_call(
        _rescale_kernel,
        out_shape=jax.ShapeDtypeStruct((B, C, HW), x_flat.dtype),
        grid_spec=pltpu.PrefetchScalarGridSpec(
            num_scalar_prefetch=0,
            grid=(B // bt, n_hw),
            in_specs=[
                pl.BlockSpec((bt, C, thw), lambda b, j: (b, 0, j)),
                pl.BlockSpec((bt, C, 1), lambda b, j: (b, 0, 0)),
            ],
            out_specs=pl.BlockSpec((bt, C, thw), lambda b, j: (b, 0, j)),
        ),
        compiler_params=pltpu.CompilerParams(
            dimension_semantics=("parallel", "parallel"),
            vmem_limit_bytes=vmem_limit,
        ),
    )(x_flat, gate)


# ----------------------------------------------------------------------------
# public wrapper
# ----------------------------------------------------------------------------
def channel_attention(x, w1, w2, *, force_two_pass=False, spatial_tile=None):
    """SE channel attention.

    x:  (B, C, H, W)
    w1: (C//r, C)   -- fc1.weight (PyTorch Linear layout, no bias)
    w2: (C, C//r)   -- fc2.weight (no bias)
    """
    B, C, H, W = x.shape
    hid = w1.shape[0]
    HW = H * W
    itemsize = x.dtype.itemsize

    x_flat = x.reshape(B, C, HW)

    vmem_cap = _vmem_capacity_bytes()
    budget = min(vmem_cap, 128 * 1024 * 1024)
    usable = int(budget * 0.6)                # headroom for compiler scratch

    per_batch = C * HW * itemsize
    bt_vmem_cap = usable // (4 * per_batch) if per_batch else 0   # in+out, 2x buffered

    if force_two_pass or bt_vmem_cap < 1:
        out_flat = _se_two_pass(x_flat, w1, w2, hid, budget,
                                thw_override=spatial_tile)
    else:
        # resident gate weights: [fc1.weight.T | fc2.weight] -> (C, 2*hid) f32
        w_cat = jnp.concatenate(
            [w1.astype(jnp.float32).T, w2.astype(jnp.float32)], axis=1)
        out_flat = _se_single_pass(x_flat, w_cat, hid, 1.0 / HW,
                                   bt_vmem_cap, budget)

    return out_flat.reshape(B, C, H, W)


# ----------------------------------------------------------------------------
# pure-JAX reference (highest matmul precision so it is ~f32-exact)
# ----------------------------------------------------------------------------
def reference(x, w1, w2):
    y = jnp.mean(x.astype(jnp.float32), axis=(2, 3))                       # (B, C)
    y = jax.nn.relu(jnp.einsum("bc,hc->bh", y, w1.astype(jnp.float32),
                               precision=jax.lax.Precision.HIGHEST))
    y = jax.nn.sigmoid(jnp.einsum("bh,ch->bc", y, w2.astype(jnp.float32),
                                  precision=jax.lax.Precision.HIGHEST))
    return x.astype(jnp.float32) * y[:, :, None, None]


if __name__ == "__main__":
    # Small shapes consistent with the module: reduction=16 -> C >= 16.
    B, C, H, W = 2, 32, 14, 14
    reduction = 16
    hid = C // reduction

    key = jax.random.PRNGKey(0)
    kx, k1, k2, kx2 = jax.random.split(key, 4)
    x = jax.random.normal(kx, (B, C, H, W), dtype=jnp.float32)
    # PyTorch Linear weight layout: (out_features, in_features), no bias.
    w1 = jax.random.normal(k1, (hid, C), dtype=jnp.float32) * 0.1
    w2 = jax.random.normal(k2, (C, hid), dtype=jnp.float32) * 0.1

    # 1) f32, fused single-pass path (HW = 196 is used unpadded as the lane dim).
    out = jax.block_until_ready(channel_attention(x, w1, w2))
    ref = reference(x, w1, w2)
    assert out.shape == (B, C, H, W)
    assert jnp.allclose(out, ref, atol=1e-4, rtol=1e-4), "f32 mismatch vs reference"

    # 2) bf16 I/O path (pool/gate stay f32; rescale runs in packed bf16).
    xb = x.astype(jnp.bfloat16)
    out_b = jax.block_until_ready(channel_attention(xb, w1, w2))
    ref_b = reference(xb.astype(jnp.float32), w1, w2)
    assert out_b.dtype == jnp.bfloat16
    assert jnp.allclose(out_b.astype(jnp.float32), ref_b, atol=5e-2, rtol=5e-2), \
        "bf16 mismatch vs reference"

    # 3) two-pass fallback path (tiled pool + tiled rescale), forced at a small
    #    shape with a 128-wide spatial tile to exercise the accumulator grid.
    x2 = jax.random.normal(kx2, (B, C, 16, 16), dtype=jnp.float32)
    out2 = jax.block_until_ready(
        channel_attention(x2, w1, w2, force_two_pass=True, spatial_tile=128))
    ref2 = reference(x2, w1, w2)
    assert out2.shape == x2.shape
    assert jnp.allclose(out2, ref2, atol=1e-4, rtol=1e-4), \
        "two-pass fallback mismatch vs reference"

    print("KERNEL_OK")
</pallas_src>

<mosaic_0001>
module attributes {stable_mosaic.version = 11 : i64} {
  func.func @_se_fused_kernel(%arg0: i32, %arg1: memref<1x32x196xf32, #tpu.memory_space<vmem>>, %arg2: memref<32x4xf32, #tpu.memory_space<vmem>>, %arg3: memref<1x32x196xf32, #tpu.memory_space<vmem>>) attributes {dimension_semantics = [#tpu.dimension_semantics<parallel>], iteration_bounds = array<i64: 2>, scalar_prefetch = 0 : i64, scratch_operands = 0 : i64, tpu.core_type = #tpu.core_type<tc>, window_params = [{transform_indices = @transform_0, window_bounds = array<i64: 1, 32, 196>}, {pipeline_mode = #tpu.pipeline_mode<synchronous>, transform_indices = @transform_1, window_bounds = array<i64: 32, 4>}, {transform_indices = @transform_2, window_bounds = array<i64: 1, 32, 196>}]} {
    %c0 = arith.constant 0 : index
    %c0_0 = arith.constant 0 : index
    %c0_1 = arith.constant 0 : index
    %0 = vector.load %arg1[%c0, %c0_0, %c0_1] : memref<1x32x196xf32, #tpu.memory_space<vmem>>, vector<1x32x196xf32>
    %cst = arith.constant dense<0.000000e+00> : vector<1x32xf32>
    %1 = vector.multi_reduction <add>, %0, %cst [2] : vector<1x32x196xf32> to vector<1x32xf32>
    %cst_2 = arith.constant 0.00510204071 : f32
    %2 = vector.broadcast %cst_2 : f32 to vector<1x32xf32>
    %3 = arith.mulf %1, %2 : vector<1x32xf32>
    %c0_3 = arith.constant 0 : index
    %c0_4 = arith.constant 0 : index
    %4 = vector.load %arg2[%c0_3, %c0_4] : memref<32x4xf32, #tpu.memory_space<vmem>>, vector<32x4xf32>
    %5 = vector.extract_strided_slice %4 {offsets = [0, 0], sizes = [32, 2], strides = [1, 1]} : vector<32x4xf32> to vector<32x2xf32>
    %6 = vector.extract_strided_slice %4 {offsets = [0, 2], sizes = [32, 2], strides = [1, 1]} : vector<32x4xf32> to vector<32x2xf32>
    %7 = vector.shape_cast %3 : vector<1x32xf32> to vector<1x32x1xf32>
    %8 = vector.shape_cast %5 : vector<32x2xf32> to vector<1x32x2xf32>
    %9 = vector.broadcast %7 : vector<1x32x1xf32> to vector<1x32x2xf32>
    %10 = arith.mulf %9, %8 : vector<1x32x2xf32>
    %cst_5 = arith.constant dense<0.000000e+00> : vector<1x2xf32>
    %11 = vector.multi_reduction <add>, %10, %cst_5 [1] : vector<1x32x2xf32> to vector<1x2xf32>
    %cst_6 = arith.constant 0.000000e+00 : f32
    %12 = vector.broadcast %cst_6 : f32 to vector<1x2xf32>
    %13 = arith.maximumf %11, %12 : vector<1x2xf32>
    %14 = vector.shape_cast %13 : vector<1x2xf32> to vector<1x1x2xf32>
    %15 = vector.shape_cast %6 : vector<32x2xf32> to vector<1x32x2xf32>
    %16 = vector.broadcast %14 : vector<1x1x2xf32> to vector<1x32x2xf32>
    %17 = arith.mulf %16, %15 : vector<1x32x2xf32>
    %cst_7 = arith.constant dense<0.000000e+00> : vector<1x32xf32>
    %18 = vector.multi_reduction <add>, %17, %cst_7 [2] : vector<1x32x2xf32> to vector<1x32xf32>
    %19 = arith.negf %18 : vector<1x32xf32>
    %20 = math.exp %19 : vector<1x32xf32>
    %cst_8 = arith.constant 1.000000e+00 : f32
    %21 = vector.broadcast %cst_8 : f32 to vector<1x32xf32>
    %22 = arith.addf %21, %20 : vector<1x32xf32>
    %23 = arith.divf %21, %22 : vector<1x32xf32>
    %c0_9 = arith.constant 0 : index
    %c0_10 = arith.constant 0 : index
    %c0_11 = arith.constant 0 : index
    %24 = vector.load %arg1[%c0_9, %c0_10, %c0_11] : memref<1x32x196xf32, #tpu.memory_space<vmem>>, vector<1x32x196xf32>
    %25 = vector.shape_cast %23 : vector<1x32xf32> to vector<1x32x1xf32>
    %26 = vector.broadcast %25 : vector<1x32x1xf32> to vector<1x32x196xf32>
    %27 = arith.mulf %24, %26 : vector<1x32x196xf32>
    %c0_12 = arith.constant 0 : index
    %c0_13 = arith.constant 0 : index
    %c0_14 = arith.constant 0 : index
    %28 = vector.load %arg3[%c0_12, %c0_13, %c0_14] : memref<1x32x196xf32, #tpu.memory_space<vmem>>, vector<1x32x196xf32>
    tpu.vector_store %arg3[%c0_12, %c0_13, %c0_14], %27 {strides = array<i32>} : memref<1x32x196xf32, #tpu.memory_space<vmem>>, vector<1x32x196xf32>,
    return
  }
  func.func @transform_0(%arg0: i32) -> (i32, i32, i32) {
    %c0_i32 = arith.constant 0 : i32
    %c0_i32_0 = arith.constant 0 : i32
    %c0_i32_1 = arith.constant 0 : i32
    return %arg0, %c0_i32, %c0_i32_0 : i32, i32, i32
  }
  func.func @transform_1(%arg0: i32) -> (i32, i32) {
    %c0_i32 = arith.constant 0 : i32
    %c0_i32_0 = arith.constant 0 : i32
    %c0_i32_1 = arith.constant 0 : i32
    return %c0_i32, %c0_i32_0 : i32, i32
  }
  func.func @transform_2(%arg0: i32) -> (i32, i32, i32) {
    %c0_i32 = arith.constant 0 : i32
    %c0_i32_0 = arith.constant 0 : i32
    %c0_i32_1 = arith.constant 0 : i32
    return %arg0, %c0_i32, %c0_i32_0 : i32, i32, i32
  }
}

</mosaic_0001>

<bundles_post_ra>
// kernel: tpu_custom_call.1
= control target key start
LH: loop header
LB: loop body
LE: loop exit
PB: predicated region body
PF: predicated region fallthrough
CT: control target
= control target key end

     0   :  { %7 = vsyncpa [#allocation3], 0  ;;  %s843_s0 = inlined_call_operand.hbm [shape: f32[2,32,196], index: 0, kind: input, shape index: {}]   ;;  %s844_s1 = inlined_call_operand.vmem [shape: f32[32,4], index: 1, kind: input, shape index: {}]   ;;  %s845_s2 = inlined_call_operand.hbm [shape: f32[2,32,196], index: 2, kind: output, shape index: {}]  }
   0x1   :  { %9 = vsyncpa [#allocation3 + $0x1], 0 }
   0x2   :  { %10 = vsyncpa [#allocation4], 0 }
   0x3   :  { %12 = vsyncpa [#allocation4 + $0x1], 0  ;;  %s634_s9 = smov 0   ;;  %s636_s10 = smov 0  }
   0x4   :  { %s638_s11 = smov 0   ;;  %s640_s12 = smov 0  }
   0x5 LB: > { %s655_s13 = sadd.s32 4294967295, %s612_s12   ;;  %s429_s14 = sadd.s32 4294967294, %s612_s12   ;;  %s612_s12 = sphi %s640_s12, %s855_s12   ;;  %s608_s11 = sphi %s638_s11, %s854_s11   ;;  %s604_s10 = sphi %s636_s10, %s853_s10   ;;  %s600_s9 = sphi %s634_s9, %s852_s9  }
   0x6   : > { %s659_s15 = sadd.s32 1, %s612_s12   ;;  %s25_s16 = sadd.s32 1, %s608_s11 }
   0x7   : > { %s22_s17 = ssub.s32 %s612_s12, %s659_s15  ;;  %p32_p0 = scmp.ne.s32.totalorder %s608_s11, %s604_s10 }
   0x8   : > { %p23_p1 = scmp.eq.s32.totalorder %s22_s17, 0  ;;  %p33_p2 = scmp.eq.s32.totalorder %s612_s12, 0 }
   0x9   : > { %p38_p3 = scmp.ne.s32.totalorder %s604_s10, %s600_s9  ;;  %p39_p4 = scmp.eq.s32.totalorder %s655_s13, 0 }
   0xa   : > { %s671_s18 = scalar_select %p23_p1, %s608_s11, %s25_s16  }
   0xb   : > { %p673_p5 = por %p33_p2, %p32_p0  ;;  %p677_p6 = por %p39_p4, %p38_p3 }
   0xc   : > { %p83_p7 = scmp.eq.s32.totalorder %s655_s13, 1  ;;  %p89_p8 = scmp.eq.s32.totalorder %s429_s14, 1 }
   0xd   : > { %p461_p10 = scmp.lt.s32.totalorder %s612_s12, 2  ;;  %s112_s23 = sand.u32 1, %s608_s11  }
   0xe   : > { %p684_p11 = por %p83_p7, %p32_p0  ;;  %p688_p12 = por %p89_p8, %p38_p3 }
   0xf   : > { %s447_s24 = sshll.u32 %s612_s12, 6  ;;  %s432_s25 = sshll.u32 %s112_s23, 6 }
  0x10   : > { %s121_s28 = scalar_lea.hbm %s843_s0, %s447_s24  ;;  %s116_s30 = scalar_lea.vmem [#allocation2], %s432_s25 }
  0x11   : > { %s122_s29 = sshll.u32 %s121_s28, 4  ;;  %s124_s3 = sshll.u32 %s116_s30, 4  ;;  %s123_s29 = int_to_ptr.hbm [resolvable:$true] %s122_s29  ;;  %s125_s3 = int_to_ptr.vmem [resolvable:$true] %s124_s3 }
  0x12   : > { %p699_p13 = pnand %p461_p10, %p673_p5  ;;  %p435_p0 = scmp.ge.s32.totalorder %s612_s12, 1 }
  0x13   : > { %p132_p1 = scmp.lt.s32.totalorder %s612_s12, 3  ;;  %s113_s5 = scalar_lea.sflag [#allocation3], %s112_s23 }
  0x14   : > { %s516_s6 = sshra.s32 %s123_s29, 4  ;;  %p520_p3 = pneg %p699_p13  ;;  %s517_s6 = int_to_ptr.hbm [resolvable:$true] %s516_s6 }
  0x15   : > { %s518_s7 = scalar_lea.hbm %s517_s6, 64  ;;  %s523_s16 = scalar_lea.hbm %s843_s0, 128 }
  0x16   : > { %p519_p2 = scmp.ne.s32.totalorder %s517_s6, %s518_s7  ;;  %p524_p5 = scmp.lt.s32.totalorder %s517_s6, %s843_s0 }
  0x17   : > { %p525_p8 = scmp.lt.s32.totalorder %s523_s16, %s518_s7 }
  0x18   : > { %p521_p4 = pnand %p520_p3, %p519_p2 }
  0x19   : > { %p526_p10 = por %p525_p8, %p524_p5 }
  0x1a   : > { %p522_p7 = pneg %p521_p4 }
  0x1c   : > { %p527_p9 = pnand %p526_p10, %p522_p7 }
  0x1e   : > { %530 = shalt.err (!%p527_p9)
}
  0x1f   : > { %s614_s23 = smov 256   ;;  %s615_s24 = smov 16  }
  0x20   : > { %456 = dma.hbm_to_vmem [thread:$0]  (!%p699_p13), %s123_s29, 1024, %s125_s3, %s113_s5, %s614_s23, %s614_s23, %s615_s24  }
  0x21   : > { %p133_p2 = pnand %p435_p0, %p132_p1 }
  0x22   : > { %s720_s25 = sand.u32 (!%p133_p2), 1, %s604_s10  }
  0x23   : > { %136 = sbr.rel (%p133_p2) target bundleno = 356 (0x164), region = 28  ;;  %s436_s26 = sshll.u32 (!%p133_p2), %s720_s25, 6 }
  0x24   : > { %s139_s27 = scalar_lea.sflag (!%p133_p2), [#allocation3], %s720_s25  ;;  %s142_s28 = scalar_lea.vmem (!%p133_p2), [#allocation2], %s436_s26 }
  0x28   : > { %591 = dma.done.wait (%p677_p6), %s139_s27, 1024  }
  0x29   : > { %593 = vsyncadd (%p677_p6), %s139_s27, 4294966272  ;;  %vm172_vm0 = vcmask 556032   ;;  %v730_v0 = vld [vmem:[%s142_s28] sm:$0xff]  ;;  %v732_v1 = vld [vmem:[%s142_s28 + $0x8] sm:$0xff]  ;;  %s616_s30 = smov 126   ;;  %vm201_vm1 = vcmask 15360  }
  0x2a   : > { %v734_v2 = vld [vmem:[%s142_s28 + $0x20] sm:$0xff]  ;;  %v173_v3 = vsel %vm172_vm0, %v732_v1, 0.0  ;;  %v738_v4 = vld [vmem:[%s142_s28 + $0x28] sm:$0xff]  ;;  %v743_v7 = vld [vmem:[%s142_s28 + $0x18] sm:$0xff]  ;;  %s448_s14 = sshll.u32 %s655_s13, 6  ;;  %s789_s16 = scalar_lea.vmem [#allocation5], %s436_s26 }
  0x2b   : > { %v174_v5 = vadd.f32 %v173_v3, %v730_v0  ;;  %v181_v6 = vsel %vm172_vm0, %v738_v4, 0.0  ;;  %v746_v9 = vld [vmem:[%s142_s28 + $0x38] sm:$0xff]  ;;  %v748_v10 = vld [vmem:[%s142_s28 + $0x10] sm:$0xff]  ;;  %v177_v11 = vsel %vm172_vm0, %v743_v7, 0.0  ;;  %v193_v14 = vld [vmem:[%s844_s1] sm:$0xff]  ;;  %s352_s19 = scalar_lea.hbm %s845_s2, %s448_s14  ;;  %s353_s23 = sshll.u32 %s789_s16, 4  ;;  %s354_s23 = int_to_ptr.vmem [resolvable:$true] %s353_s23 }
  0x2c   : > { %v182_v8 = vadd.f32 %v181_v6, %v734_v2  ;;  %v752_v12 = vld [vmem:[%s142_s28 + $0x30] sm:$0xff]  ;;  %v185_v13 = vsel %vm172_vm0, %v746_v9, 0.0  ;;  %220 = vrot.lane.b32.xlu2 %v193_v14, %s616_s30  ;;  %v178_v15 = vadd.f32 %v177_v11, %v748_v10  ;;  %v194_v17 = vld [vmem:[%s844_s1 + $0x8] sm:$0xff]  ;;  %v196_v19 = vld [vmem:[%s844_s1 + $0x18] sm:$0xff]  ;;  %s355_s24 = sshll.u32 %s352_s19, 4  ;;  %s341_s26 = scalar_lea.sflag [#allocation4], %s720_s25  ;;  %s356_s24 = int_to_ptr.hbm [resolvable:$true] %s355_s24 }
  0x2d   : > { %175 = vadd.xlane.f32.xlu0 %v174_v5  ;;  %v186_v16 = vadd.f32 %v185_v13, %v752_v12  ;;  %v195_v18 = vld [vmem:[%s844_s1 + $0x10] sm:$0xff]  ;;  %s560_s27 = sshra.s32 %s356_s24, 4  ;;  %s561_s27 = int_to_ptr.hbm [resolvable:$true] %s560_s27 }
  0x2e   : > { %183 = vadd.xlane.f32.xlu1 %v182_v8  ;;  %s562_s28 = scalar_lea.hbm %s561_s27, 64  ;;  %p567_p0 = scmp.lt.s32.totalorder %s561_s27, %s845_s2 }
  0x2f   : > { %p563_p6 = scmp.ne.s32.totalorder %s561_s27, %s562_s28 }
  0x31   : > { %p564_p9 = pnand %p563_p6, %p684_p11 }
  0x33   : > { %p565_p13 = pneg %p564_p9 }
  0x34   : > { %222 = vrot.lane.b32.xlu2 %v194_v17, %s616_s30 }
  0x35   : > { %179 = vadd.xlane.f32.xlu0 %v178_v15 }
  0x36   : > { %187 = vadd.xlane.f32.xlu1 %v186_v16 }
  0x49   : > { %224 = vrot.lane.b32.xlu0 %v195_v18, %s616_s30 }
  0x4f   : > { %226 = vrot.lane.b32.xlu1 %v196_v19, %s616_s30  ;;  %s566_s30 = scalar_lea.hbm %s845_s2, 128 }
  0x50   : > { %p568_p1 = scmp.lt.s32.totalorder %s566_s30, %s562_s28 }
  0x52   : > { %p569_p3 = por %p568_p1, %p567_p0 }
  0x54   : > { %p570_p4 = pnand %p569_p3, %p565_p13 }
  0x86   : > { %v221_v40 = vpop.permute.xlu2 %220 }
  0x8e   : > { %v223_v46 = vpop.permute.xlu2 %222 }
  0xa0   : > { %v176_v20 = vpop.xlane.xlu0 %175 }
  0xa1   : > { %v184_v21 = vpop.xlane.xlu1 %183  ;;  %v189_v22 = vmul.f32 0.0051020407, %v176_v20 }
  0xa2   : > { %v191_v23 = vmul.f32 0.0051020407, %v184_v21 }
  0xa3   : > { %v197_v25 = vmul.f32 %v193_v14, %v189_v22 }
  0xa4   : > { %v199_v29 = vmul.f32 %v195_v18, %v191_v23 }
  0xa5   : > { %v202_v32 = vsel %vm201_vm1, %v197_v25, 0.0 }
  0xa6   : > { %v205_v35 = vsel %vm201_vm1, %v199_v29, 0.0 }
  0xa8   : > { %v180_v24 = vpop.xlane.xlu0 %179 }
  0xa9   : > { %v190_v26 = vmul.f32 0.0051020407, %v180_v24  ;;  %v188_v27 = vpop.xlane.xlu1 %187 }
  0xaa   : > { %v192_v28 = vmul.f32 0.0051020407, %v188_v27 }
  0xab   : > { %v198_v30 = vmul.f32 %v194_v17, %v190_v26 }
  0xac   : > { %v200_v31 = vmul.f32 %v196_v19, %v192_v28 }
  0xad   : > { %v203_v33 = vsel %vm201_vm1, %v198_v30, 0.0 }
  0xae   : > { %v204_v34 = vadd.f32 %v203_v33, %v202_v32  ;;  %v207_v36 = vsel %vm201_vm1, %v200_v31, 0.0 }
  0xb0   : > { %v206_v37 = vadd.f32 %v205_v35, %v204_v34 }
  0xb2   : > { %v208_v38 = vadd.f32 %v207_v36, %v206_v37 }
  0xb4   : > { %v209_v39 = vrot.slane %v208_v38, 4 }
  0xb6   : > { %v210_v41 = vadd.f32 %v209_v39, %v208_v38 }
  0xb8   : > { %v211_v42 = vrot.slane %v210_v41, 2 }
  0xba   : > { %v212_v43 = vadd.f32 %v211_v42, %v210_v41 }
  0xbb   : > { %v225_v47 = vpop.permute.xlu0 %224 }
  0xbc   : > { %v213_v44 = vrot.slane %v212_v43, 1 }
  0xbe   : > { %v214_v45 = vadd.f32 %v213_v44, %v212_v43 }
  0xc0   : > { %v215_v48 = vmax.f32 %v214_v45, 0.0 }
  0xc1   : > { %v227_v55 = vpop.permute.xlu1 %226 }
  0xc2   : > { %v232_v49 = vmul.f32 %v221_v40, %v215_v48  ;;  %v233_v50 = vmul.f32 %v223_v46, %v215_v48  ;;  %v234_v51 = vmul.f32 %v225_v47, %v215_v48  ;;  %v235_v56 = vmul.f32 %v227_v55, %v215_v48 }
  0xc4   : > { %v239_v52 = vsel %vm201_vm1, %v233_v50, 0.0  ;;  %v236_v53 = vsel %vm201_vm1, %v232_v49, 0.0  ;;  %v242_v54 = vsel %vm201_vm1, %v234_v51, 0.0  ;;  %v245_v57 = vsel %vm201_vm1, %v235_v56, 0.0 }
  0xc5   : > { %240 = vadd.xlane.f32.xlu0 %v239_v52  ;;  %237 = vadd.xlane.f32.xlu2 %v236_v53 }
  0xc6   : > { %243 = vadd.xlane.f32.xlu1 %v242_v54 }
  0xcd   : > { %246 = vadd.xlane.f32.xlu2 %v245_v57 }
 0x138   : > { %v238_v58 = vpop.xlane.xlu2 %237  ;;  %v241_v59 = vpop.xlane.xlu0 %240 }
 0x139   : > { %v438_v60 = vmul.f32 -1.442695, %v238_v58  ;;  %v244_v61 = vpop.xlane.xlu1 %243  ;;  %v439_v62 = vmul.f32 -1.442695, %v241_v59 }
 0x13a   : > { %v440_v63 = vmul.f32 -1.442695, %v244_v61 }
 0x13b   : > { %500 = vpow2.f32 %v438_v60 }
 0x13c   : > { %502 = vpow2.f32 %v440_v63 }
 0x13d   : > { %504 = vpow2.f32 %v439_v62 }
 0x140   : > { %v247_v3 = vpop.xlane.xlu2 %246 }
 0x141   : > { %v501_v5 = vpop.eup %500  ;;  %v441_v6 = vmul.f32 -1.442695, %v247_v3 }
 0x142   : > { %v503_v8 = vpop.eup %502  ;;  %v260_v11 = vadd.f32 1.0, %v501_v5 }
 0x143   : > { %v505_v13 = vpop.eup %504  ;;  %v262_v14 = vadd.f32 1.0, %v503_v8  ;;  %506 = vpow2.f32 %v441_v6 }
 0x144   : > { %508 = vrcp.f32 %v260_v11  ;;  %v261_v15 = vadd.f32 1.0, %v505_v13  ;;  %v273_v23 = vand.u32 2147483647, %v260_v11  ;;  %v275_v24 = vand.u32 2147483648, %v260_v11 }
 0x145   : > { %510 = vrcp.f32 %v262_v14  ;;  %v305_v27 = vand.u32 2147483648, %v262_v14  ;;  %vm269_vm2 = vweird.f32 %v260_v11  ;;  %vm299_vm4 = vweird.f32 %v262_v14 }
 0x146   : > { %512 = vrcp.f32 %v261_v15  ;;  %v303_v31 = vand.u32 2147483647, %v262_v14  ;;  %vm274_vm6 = vcmp.eq.f32.partialorder %v273_v23, 8.507059e+37  ;;  %v276_v33 = vor.u32 1.1754944e-38, %v275_v24 }
 0x147   : > { %v306_v37 = vor.u32 1.1754944e-38, %v305_v27  ;;  %v288_v38 = vand.u32 2147483647, %v261_v15  ;;  %v290_v39 = vand.u32 2147483648, %v261_v15  ;;  %vm284_vm11 = vweird.f32 %v261_v15 }
 0x148   : > { %vm304_vm10 = vcmp.eq.f32.partialorder %v303_v31, 8.507059e+37 }
 0x149   : > { %v507_v16 = vpop.eup %506  ;;  %v291_v51 = vor.u32 1.1754944e-38, %v290_v39  ;;  %vm289_vm13 = vcmp.eq.f32.partialorder %v288_v38, 8.507059e+37 }
 0x14a   : > { %v509_v17 = vpop.eup %508  ;;  %v778_v18 = vadd.f32 1.0, %v507_v16 }
 0x14b   : > { %v511_v19 = vpop.eup %510  ;;  %v265_v20 = vmul.f32 %v509_v17, %v260_v11  ;;  %vm270_vm3 = vweird.f32 %v509_v17 }
 0x14c   : > { %v295_v21 = vmul.f32 %v511_v19, %v262_v14  ;;  %514 = vrcp.f32 %v778_v18  ;;  %v513_v25 = vpop.eup %512  ;;  %vm300_vm5 = vweird.f32 %v511_v19  ;;  %vm271_vm7 = vmor %vm269_vm2, %vm270_vm3  ;;  %v318_v53 = vand.u32 2147483647, %v778_v18 }
 0x14d   : > { %v266_v22 = vsub.f32 1.0, %v265_v20  ;;  %v280_v29 = vmul.f32 %v513_v25, %v261_v15  ;;  %vm301_vm8 = vmor %vm299_vm4, %vm300_vm5  ;;  %vm285_vm9 = vweird.f32 %v513_v25  ;;  %vm314_vm15 = vweird.f32 %v778_v18 }
 0x14e   : > { %v296_v26 = vsub.f32 1.0, %v295_v21  ;;  %vm286_vm12 = vmor %vm284_vm11, %vm285_vm9  ;;  %vm319_vm2 = vcmp.eq.f32.partialorder %v318_v53, 8.507059e+37 }
 0x14f   : > { %v267_v28 = vmul.f32 %v509_v17, %v266_v22  ;;  %v281_v34 = vsub.f32 1.0, %v280_v29 }
 0x150   : > { %v297_v30 = vmul.f32 %v511_v19, %v296_v26 }
 0x151   : > { %v268_v32 = vadd.f32 %v509_v17, %v267_v28  ;;  %v282_v41 = vmul.f32 %v513_v25, %v281_v34 }
 0x152   : > { %v515_v35 = vpop.eup %514  ;;  %v298_v36 = vadd.f32 %v511_v19, %v297_v30 }
 0x153   : > { %v272_v40 = vsel %vm271_vm7, %v509_v17, %v268_v32  ;;  %v310_v42 = vmul.f32 %v515_v35, %v778_v18  ;;  %v283_v48 = vadd.f32 %v513_v25, %v282_v41  ;;  %vm315_vm14 = vweird.f32 %v515_v35 }
 0x154   : > { %v277_v43 = vsel %vm274_vm6, %v276_v33, %v272_v40  ;;  %v302_v44 = vsel %vm301_vm8, %v511_v19, %v298_v36  ;;  %vm316_vm1 = vmor %vm314_vm15, %vm315_vm14 }
 0x155   : > { %v324_v45 = vmul.f32 %v277_v43, %v730_v0  ;;  %v325_v46 = vmul.f32 %v277_v43, %v732_v1  ;;  %v307_v47 = vsel %vm304_vm10, %v306_v37, %v302_v44  ;;  %v311_v52 = vsub.f32 1.0, %v310_v42 }
 0x156   : > { %v328_v49 = vmul.f32 %v307_v47, %v734_v2  ;;  %v329_v50 = vmul.f32 %v307_v47, %v738_v4  ;;  %v287_v0 = vsel %vm286_vm12, %v513_v25, %v283_v48  ;;  %v320_v1 = vand.u32 2147483648, %v778_v18 }
 0x157   : > { %332 = vst [vmem:[%s789_s16] sm:$0xff] %v324_v45  ;;  %v292_v2 = vsel %vm289_vm13, %v291_v51, %v287_v0  ;;  %v312_v4 = vmul.f32 %v515_v35, %v311_v52 }
 0x158   : > { %333 = vst.msk [vmem:[%s789_s16 + $0x8] sm:$0xff] %vm172_vm0, %v325_v46  ;;  %v326_v54 = vmul.f32 %v292_v2, %v748_v10  ;;  %v327_v55 = vmul.f32 %v292_v2, %v743_v7  ;;  %v321_v57 = vor.u32 1.1754944e-38, %v320_v1 }
 0x159   : > { %336 = vst [vmem:[%s789_s16 + $0x20] sm:$0xff] %v328_v49  ;;  %v313_v56 = vadd.f32 %v515_v35, %v312_v4 }
 0x15a   : > { %337 = vst.msk [vmem:[%s789_s16 + $0x28] sm:$0xff] %vm172_vm0, %v329_v50 }
 0x15b   : > { %334 = vst [vmem:[%s789_s16 + $0x10] sm:$0xff] %v326_v54  ;;  %v317_v58 = vsel %vm316_vm1, %v515_v35, %v313_v56 }
 0x15c   : > { %335 = vst.msk [vmem:[%s789_s16 + $0x18] sm:$0xff] %vm172_vm0, %v327_v55  ;;  %v322_v10 = vsel %vm319_vm2, %v321_v57, %v317_v58 }
 0x15d   : > { %v330_v7 = vmul.f32 %v322_v10, %v752_v12  ;;  %v331_v59 = vmul.f32 %v322_v10, %v746_v9 }
 0x15f   : > { %338 = vst [vmem:[%s789_s16 + $0x30] sm:$0xff] %v330_v7 }
 0x160   : > { %339 = vst.msk [vmem:[%s789_s16 + $0x38] sm:$0xff] %vm172_vm0, %v331_v59 }
 0x161   : > { %573 = shalt.err (!%p570_p4)
}
 0x162   : > { %s617_s25 = smov 256   ;;  %s618_s5 = smov 16  }
 0x163   : > { %451 = dma.vmem_to_hbm [thread:$0]  (%p684_p11), %s354_s23, 1024, %s356_s24, %s341_s26, %s617_s25, %s617_s25, %s618_s5  }
 0x164 PF: > { %s370_s6 = sand.u32 1, %s600_s9   ;;  %p851_p7 = scmp.ge.s32.totalorder %s612_s12, 2 }
 0x165   : > { %s371_s7 = scalar_lea.sflag [#allocation4], %s370_s6 }
 0x166   : > { %p458_p5 = pnand %p851_p7, %p688_p12 }
 0x168   : > { %p459_p8 = pneg %p458_p5 }
 0x16a   : > { %595 = dma.done.wait (%p459_p8), %s371_s7, 1024  }
 0x16b   : > { %597 = vsyncadd (%p459_p8), %s371_s7, 4294966272  ;;  %p15_p10 = scmp.ge.s32.totalorder %s659_s15, 4   ;;  %s852_s9 = smov %s604_s10 }
 0x16c   : > { %s853_s10 = smov %s608_s11  ;;  %s854_s11 = smov %s671_s18 }
 0x16d   : > { %s855_s12 = smov %s659_s15  ;;  %17 = sbr.rel (!%p15_p10) target bundleno = 5 (0x5), region = 73 }
 0x172   :  { %377 = vsyncpa [#allocation3], 1 }
 0x173   :  { %379 = vsyncpa [#allocation3 + $0x1], 1 }
 0x174   :  { %380 = vsyncpa [#allocation4], 1 }
 0x175   :  { %382 = vsyncpa [#allocation4 + $0x1], 1 }

</bundles_post_ra>
